<compile_context>
chip_gen: v7x
topology: tpu7x:2x2x1
jax: 0.10.0
libtpu: 0.0.40
codegen_flags: <defaults>
</compile_context>

<pallas_src>
import math

import numpy as np
import jax
import jax.numpy as jnp
from jax import lax
from jax.experimental import pallas as pl
from jax.experimental.pallas import tpu as pltpu

KD = KH = KW = 3
PAD = 1
EPS = 1e-5


def _round_up(a, b):
    return (a + b - 1) // b * b


def _conv3d_kernel(x_ref, w_ref, y_ref, sum_ref, ssq_ref):
    """One MXU matmul per row-block + partial BN statistics.

    x_ref  : (TM, Kp)   im2col'd input rows (K = 9*(W+2)*Cin, zero-padded to Kp)
    w_ref  : (Kp, W*Cp) folded block-Toeplitz weight
    y_ref  : (TM, W*Cp) conv output (lane-dense)
    sum_ref: (1, W*Cp)  per-block column sums      (for BN stats)
    ssq_ref: (1, W*Cp)  per-block column sum-of-sq (for BN stats)
    """
    acc = jnp.dot(x_ref[...], w_ref[...], preferred_element_type=jnp.float32)
    y_ref[...] = acc.astype(y_ref.dtype)
    sum_ref[0, :] = jnp.sum(acc, axis=0)
    ssq_ref[0, :] = jnp.sum(acc * acc, axis=0)


def _bn_relu_kernel(y_ref, scale_ref, shift_ref, o_ref):
    # y_ref / o_ref: (RB, W*Cp) lane-dense row block; scale/shift: (1, W*Cp)
    o_ref[...] = jnp.maximum(
        y_ref[...] * scale_ref[0] + shift_ref[0], 0.0).astype(o_ref.dtype)


def conv3d_block_forward(x_ncdhw, weight, bias, gamma, beta, eps=EPS):
    """Conv3d(k=3, s=1, p=1, bias) + BatchNorm3d (train-mode stats) + ReLU.

    x_ncdhw : (N, Cin, D, H, W)   float32
    weight  : (Cout, Cin, 3, 3, 3)
    bias    : (Cout,)   accepted for API parity; training-mode BN makes the
                        output exactly invariant to it, so it is not used.
    gamma, beta : (Cout,) BN affine parameters
    returns : (N, Cout, D, H, W)
    """
    del bias  # cancels exactly in (y - mean) and in var under training-mode BN

    N, Cin, D, H, W = x_ncdhw.shape
    Cout = weight.shape[0]
    Dp, Hp, Wp = D + 2 * PAD, H + 2 * PAD, W + 2 * PAD

    # Pad channels so the fused (w, channel) lane axis is a multiple of 128.
    # NOTE: for awkward W (e.g. 7, 12) this rule over-pads Cp; pad W instead
    # when Cout is small.  For W=8 here Cp=16, WC=128.
    g = 128 // math.gcd(W, 128)
    Cp = g * ((Cout + g - 1) // g)
    WC = W * Cp                       # lane width of conv output / BN pass
    WPC = Wp * Cin                    # contraction width of one (kd, kh) tap
    K9 = KD * KH * WPC                # folded contraction width
    Kp = _round_up(K9, 128)           # lane-aligned K

    # Row tiling: TM for the matmul pass, RB (a multiple of TM) for the
    # HBM-bound BN/ReLU pass.  Rows are zero-padded to a multiple of RB
    # (zero rows contribute nothing to the BN sums).
    rows = N * D * H
    TM = min(256, _round_up(rows, 8))
    RB = min(1024, _round_up(rows, TM))
    rows_p = _round_up(rows, RB)
    grid_m = rows_p // TM

    # ---- wrapper-side layout plumbing (no compute) ---------------------------
    # Partial im2col over (kd, kh): x9[(n,d,h), t*WPC + wp*Cin + ci]
    #   = xpad[n, d+kd, h+kh, wp, ci]  with t = kd*3 + kh.
    x_cl = jnp.transpose(x_ncdhw, (0, 2, 3, 4, 1))                 # NDHWC
    xpad = jnp.pad(x_cl, ((0, 0), (PAD, PAD), (PAD, PAD), (PAD, PAD), (0, 0)))
    slabs = [xpad[:, kd:kd + D, kh:kh + H].reshape(N, D * H, WPC)
             for kd in range(KD) for kh in range(KH)]
    x9 = jnp.concatenate(slabs, axis=-1).reshape(rows, K9)
    x9 = jnp.pad(x9, ((0, rows_p - rows), (0, Kp - K9)))

    # Folded block-Toeplitz weight, built with a one-hot einsum:
    #   B[(kd,kh), (w+kw)*Cin + ci, w*Cp + co] = weight[co, ci, kd, kh, kw]
    wt = jnp.transpose(weight, (2, 3, 4, 1, 0)).astype(jnp.float32)  # kd,kh,kw,ci,co
    sel = (jnp.arange(Wp)[None, :, None] ==
           (jnp.arange(W)[None, None, :] + jnp.arange(KW)[:, None, None])
           ).astype(jnp.float32)                                     # (kw, wp, w)
    B = jnp.einsum('kpw,dhkio->dhpiwo', sel, wt)       # (3,3,Wp,Cin,W,Cout)
    B = jnp.pad(B, ((0, 0),) * 5 + ((0, Cp - Cout),))  # pad channels -> Cp
    B = B.reshape(K9, WC)
    B = jnp.pad(B, ((0, Kp - K9), (0, 0)))             # pad K -> Kp

    # ---- pass 1: conv (one matmul per row block) + partial BN sums -----------
    y, s, ssq = pl.pallas_call(
        _conv3d_kernel,
        out_shape=(
            jax.ShapeDtypeStruct((rows_p, WC), jnp.float32),
            jax.ShapeDtypeStruct((grid_m, WC), jnp.float32),
            jax.ShapeDtypeStruct((grid_m, WC), jnp.float32),
        ),
        grid_spec=pltpu.PrefetchScalarGridSpec(
            num_scalar_prefetch=0,
            grid=(grid_m,),
            in_specs=[
                pl.BlockSpec((TM, Kp), lambda m: (m, 0)),
                pl.BlockSpec((Kp, WC), lambda m: (0, 0)),
            ],
            out_specs=[
                pl.BlockSpec((TM, WC), lambda m: (m, 0)),
                pl.BlockSpec((1, WC), lambda m: (m, 0)),
                pl.BlockSpec((1, WC), lambda m: (m, 0)),
            ],
        ),
        compiler_params=pltpu.CompilerParams(
            dimension_semantics=("parallel",)),
    )(x9, B)

    # ---- BatchNorm3d (training mode) statistics over (N, D, H, W) ------------
    count = N * D * H * W
    ch_sum = jnp.sum(s, axis=0).reshape(W, Cp).sum(axis=0)
    ch_ssq = jnp.sum(ssq, axis=0).reshape(W, Cp).sum(axis=0)
    mean = ch_sum / count
    var = jnp.maximum(ch_ssq / count - mean * mean, 0.0)
    gamma_p = jnp.pad(gamma, (0, Cp - Cout))
    beta_p = jnp.pad(beta, (0, Cp - Cout))
    scale = gamma_p * lax.rsqrt(var + eps)
    shift = beta_p - mean * scale
    scale_row = jnp.tile(scale, W).reshape(1, WC)
    shift_row = jnp.tile(shift, W).reshape(1, WC)

    # ---- pass 2: BN scale/shift + ReLU, in place, large lane-dense blocks ----
    out2 = pl.pallas_call(
        _bn_relu_kernel,
        out_shape=jax.ShapeDtypeStruct((rows_p, WC), jnp.float32),
        grid_spec=pltpu.PrefetchScalarGridSpec(
            num_scalar_prefetch=0,
            grid=(rows_p // RB,),
            in_specs=[
                pl.BlockSpec((RB, WC), lambda m: (m, 0)),
                pl.BlockSpec((1, WC), lambda m: (0, 0)),
                pl.BlockSpec((1, WC), lambda m: (0, 0)),
            ],
            out_specs=pl.BlockSpec((RB, WC), lambda m: (m, 0)),
        ),
        input_output_aliases={0: 0},
        compiler_params=pltpu.CompilerParams(
            dimension_semantics=("parallel",)),
    )(y, scale_row, shift_row)

    out = out2[:rows].reshape(N, D, H, W, Cp)[..., :Cout]
    return jnp.transpose(out, (0, 4, 1, 2, 3))                      # NCDHW


def _reference(x_ncdhw, weight, bias, gamma, beta, eps=EPS):
    # Pure-JAX reference: conv_general_dilated + BN(train, biased var) + ReLU.
    x = jnp.transpose(x_ncdhw, (0, 2, 3, 4, 1))
    w = jnp.transpose(weight, (2, 3, 4, 1, 0))              # DHWIO
    y = lax.conv_general_dilated(
        x, w, window_strides=(1, 1, 1), padding=((1, 1),) * 3,
        dimension_numbers=("NDHWC", "DHWIO", "NDHWC")) + bias
    mean = jnp.mean(y, axis=(0, 1, 2, 3))
    var = jnp.mean((y - mean) ** 2, axis=(0, 1, 2, 3))
    y = (y - mean) / jnp.sqrt(var + eps) * gamma + beta
    y = jnp.maximum(y, 0.0)
    return jnp.transpose(y, (0, 4, 1, 2, 3))


if __name__ == "__main__":
    # Small shapes consistent with Conv3dBlock(in_planes=4, out_planes=8).
    N, Cin, Cout = 2, 4, 8
    D = H = W = 8

    key = jax.random.PRNGKey(0)
    kx, kw_, kb, kg, kbeta = jax.random.split(key, 5)
    x = jax.random.normal(kx, (N, Cin, D, H, W), dtype=jnp.float32)
    weight = jax.random.normal(kw_, (Cout, Cin, KD, KH, KW), dtype=jnp.float32) * 0.1
    bias = jax.random.normal(kb, (Cout,), dtype=jnp.float32) * 0.1
    gamma = 1.0 + 0.1 * jax.random.normal(kg, (Cout,), dtype=jnp.float32)
    beta = 0.1 * jax.random.normal(kbeta, (Cout,), dtype=jnp.float32)

    fwd = jax.jit(conv3d_block_forward)
    out = jax.block_until_ready(fwd(x, weight, bias, gamma, beta))

    ref = jax.block_until_ready(_reference(x, weight, bias, gamma, beta))
    np.testing.assert_allclose(np.asarray(out), np.asarray(ref), rtol=2e-4, atol=2e-4)

    print("KERNEL_OK")
</pallas_src>

<mosaic_0001>
module attributes {stable_mosaic.version = 11 : i64} {
  func.func @_conv3d_kernel(%arg0: i32, %arg1: memref<128x384xf32, #tpu.memory_space<vmem>>, %arg2: memref<384x128xf32, #tpu.memory_space<vmem>>, %arg3: memref<128x128xf32, #tpu.memory_space<vmem>>, %arg4: memref<1x128xf32, #tpu.memory_space<vmem>>, %arg5: memref<1x128xf32, #tpu.memory_space<vmem>>) attributes {dimension_semantics = [#tpu.dimension_semantics<parallel>], iteration_bounds = array<i64: 1>, scalar_prefetch = 0 : i64, scratch_operands = 0 : i64, tpu.core_type = #tpu.core_type<tc>, window_params = [{transform_indices = @transform_0, window_bounds = array<i64: 128, 384>}, {pipeline_mode = #tpu.pipeline_mode<synchronous>, transform_indices = @transform_1, window_bounds = array<i64: 384, 128>}, {transform_indices = @transform_2, window_bounds = array<i64: 128, 128>}, {transform_indices = @transform_3, window_bounds = array<i64: 1, 128>}, {transform_indices = @transform_4, window_bounds = array<i64: 1, 128>}]} {
    %c0 = arith.constant 0 : index
    %c0_0 = arith.constant 0 : index
    %0 = vector.load %arg1[%c0, %c0_0] : memref<128x384xf32, #tpu.memory_space<vmem>>, vector<128x384xf32>
    %c0_1 = arith.constant 0 : index
    %c0_2 = arith.constant 0 : index
    %1 = vector.load %arg2[%c0_1, %c0_2] : memref<384x128xf32, #tpu.memory_space<vmem>>, vector<384x128xf32>
    %cst = arith.constant dense<0.000000e+00> : vector<128x128xf32>
    %2 = tpu.matmul %0, %1, %cst {dimension_numbers = #tpu.dot_dimension_numbers<[1], [0], [0], [1], [0, 0, 1, 1], [], []>} : vector<128x384xf32>, vector<384x128xf32>, vector<128x128xf32> -> vector<128x128xf32>
    %c0_3 = arith.constant 0 : index
    %c0_4 = arith.constant 0 : index
    %3 = vector.load %arg3[%c0_3, %c0_4] : memref<128x128xf32, #tpu.memory_space<vmem>>, vector<128x128xf32>
    tpu.vector_store %arg3[%c0_3, %c0_4], %2 {strides = array<i32>} : memref<128x128xf32, #tpu.memory_space<vmem>>, vector<128x128xf32>,
    %cst_5 = arith.constant dense<0.000000e+00> : vector<128xf32>
    %4 = vector.multi_reduction <add>, %2, %cst_5 [0] : vector<128x128xf32> to vector<128xf32>
    %c0_6 = arith.constant 0 : index
    %c0_7 = arith.constant 0 : index
    %5 = vector.load %arg4[%c0_6, %c0_7] : memref<1x128xf32, #tpu.memory_space<vmem>>, vector<1x128xf32>
    %6 = vector.shape_cast %5 : vector<1x128xf32> to vector<128xf32>
    %7 = vector.shape_cast %4 : vector<128xf32> to vector<1x128xf32>
    tpu.vector_store %arg4[%c0_6, %c0_7], %7 {strides = array<i32>} : memref<1x128xf32, #tpu.memory_space<vmem>>, vector<1x128xf32>,
    %8 = arith.mulf %2, %2 : vector<128x128xf32>
    %cst_8 = arith.constant dense<0.000000e+00> : vector<128xf32>
    %9 = vector.multi_reduction <add>, %8, %cst_8 [0] : vector<128x128xf32> to vector<128xf32>
    %c0_9 = arith.constant 0 : index
    %c0_10 = arith.constant 0 : index
    %10 = vector.load %arg5[%c0_9, %c0_10] : memref<1x128xf32, #tpu.memory_space<vmem>>, vector<1x128xf32>
    %11 = vector.shape_cast %10 : vector<1x128xf32> to vector<128xf32>
    %12 = vector.shape_cast %9 : vector<128xf32> to vector<1x128xf32>
    tpu.vector_store %arg5[%c0_9, %c0_10], %12 {strides = array<i32>} : memref<1x128xf32, #tpu.memory_space<vmem>>, vector<1x128xf32>,
    return
  }
  func.func @transform_0(%arg0: i32) -> (i32, i32) {
    %c0_i32 = arith.constant 0 : i32
    %c0_i32_0 = arith.constant 0 : i32
    return %arg0, %c0_i32 : i32, i32
  }
  func.func @transform_1(%arg0: i32) -> (i32, i32) {
    %c0_i32 = arith.constant 0 : i32
    %c0_i32_0 = arith.constant 0 : i32
    %c0_i32_1 = arith.constant 0 : i32
    return %c0_i32, %c0_i32_0 : i32, i32
  }
  func.func @transform_2(%arg0: i32) -> (i32, i32) {
    %c0_i32 = arith.constant 0 : i32
    %c0_i32_0 = arith.constant 0 : i32
    return %arg0, %c0_i32 : i32, i32
  }
  func.func @transform_3(%arg0: i32) -> (i32, i32) {
    %c0_i32 = arith.constant 0 : i32
    %c0_i32_0 = arith.constant 0 : i32
    return %arg0, %c0_i32 : i32, i32
  }
  func.func @transform_4(%arg0: i32) -> (i32, i32) {
    %c0_i32 = arith.constant 0 : i32
    %c0_i32_0 = arith.constant 0 : i32
    return %arg0, %c0_i32 : i32, i32
  }
}

module attributes {stable_mosaic.version = 11 : i64} {
  func.func @_bn_relu_kernel(%arg0: i32, %arg1: memref<128x128xf32, #tpu.memory_space<vmem>>, %arg2: memref<1x128xf32, #tpu.memory_space<vmem>>, %arg3: memref<1x128xf32, #tpu.memory_space<vmem>>, %arg4: memref<128x128xf32, #tpu.memory_space<vmem>>) attributes {dimension_semantics = [#tpu.dimension_semantics<parallel>], iteration_bounds = array<i64: 1>, scalar_prefetch = 0 : i64, scratch_operands = 0 : i64, tpu.core_type = #tpu.core_type<tc>, window_params = [{transform_indices = @transform_0, window_bounds = array<i64: 128, 128>}, {pipeline_mode = #tpu.pipeline_mode<synchronous>, transform_indices = @transform_1, window_bounds = array<i64: 1, 128>}, {pipeline_mode = #tpu.pipeline_mode<synchronous>, transform_indices = @transform_2, window_bounds = array<i64: 1, 128>}, {transform_indices = @transform_3, window_bounds = array<i64: 128, 128>}]} {
    %c0 = arith.constant 0 : index
    %c0_0 = arith.constant 0 : index
    %0 = vector.load %arg1[%c0, %c0_0] : memref<128x128xf32, #tpu.memory_space<vmem>>, vector<128x128xf32>
    %c0_1 = arith.constant 0 : index
    %c0_2 = arith.constant 0 : index
    %1 = vector.load %arg2[%c0_1, %c0_2] : memref<1x128xf32, #tpu.memory_space<vmem>>, vector<1x128xf32>
    %2 = vector.shape_cast %1 : vector<1x128xf32> to vector<128xf32>
    %3 = vector.shape_cast %2 : vector<128xf32> to vector<1x128xf32>
    %4 = vector.broadcast %3 : vector<1x128xf32> to vector<128x128xf32>
    %5 = arith.mulf %0, %4 : vector<128x128xf32>
    %c0_3 = arith.constant 0 : index
    %c0_4 = arith.constant 0 : index
    %6 = vector.load %arg3[%c0_3, %c0_4] : memref<1x128xf32, #tpu.memory_space<vmem>>, vector<1x128xf32>
    %7 = vector.shape_cast %6 : vector<1x128xf32> to vector<128xf32>
    %8 = vector.shape_cast %7 : vector<128xf32> to vector<1x128xf32>
    %9 = vector.broadcast %8 : vector<1x128xf32> to vector<128x128xf32>
    %10 = arith.addf %5, %9 : vector<128x128xf32>
    %cst = arith.constant 0.000000e+00 : f32
    %11 = vector.broadcast %cst : f32 to vector<128x128xf32>
    %12 = arith.maximumf %10, %11 : vector<128x128xf32>
    %c0_5 = arith.constant 0 : index
    %c0_6 = arith.constant 0 : index
    %13 = vector.load %arg4[%c0_5, %c0_6] : memref<128x128xf32, #tpu.memory_space<vmem>>, vector<128x128xf32>
    tpu.vector_store %arg4[%c0_5, %c0_6], %12 {strides = array<i32>} : memref<128x128xf32, #tpu.memory_space<vmem>>, vector<128x128xf32>,
    return
  }
  func.func @transform_0(%arg0: i32) -> (i32, i32) {
    %c0_i32 = arith.constant 0 : i32
    %c0_i32_0 = arith.constant 0 : i32
    return %arg0, %c0_i32 : i32, i32
  }
  func.func @transform_1(%arg0: i32) -> (i32, i32) {
    %c0_i32 = arith.constant 0 : i32
    %c0_i32_0 = arith.constant 0 : i32
    %c0_i32_1 = arith.constant 0 : i32
    return %c0_i32, %c0_i32_0 : i32, i32
  }
  func.func @transform_2(%arg0: i32) -> (i32, i32) {
    %c0_i32 = arith.constant 0 : i32
    %c0_i32_0 = arith.constant 0 : i32
    %c0_i32_1 = arith.constant 0 : i32
    return %c0_i32, %c0_i32_0 : i32, i32
  }
  func.func @transform_3(%arg0: i32) -> (i32, i32) {
    %c0_i32 = arith.constant 0 : i32
    %c0_i32_0 = arith.constant 0 : i32
    return %arg0, %c0_i32 : i32, i32
  }
}

</mosaic_0001>

<bundles_post_ra>
// kernel: tile.18
= control target key start
LH: loop header
LB: loop body
LE: loop exit
PB: predicated region body
PF: predicated region fallthrough
CT: control target
= control target key end

     0   :  { %s22_s0 = inlined_call_operand.vmem [shape: f32[16], index: 0, kind: input, shape index: {}]   ;;  %s23_s1 = inlined_call_operand.vmem [shape: f32[8,16], index: 1, kind: output, shape index: {}]  }
   0x1   :  { %v4_v0 = vld [vmem:[%s22_s0] ss:$0 sm:$0xff] }
   0x2   :  { %5 = vst [vmem:[%s23_s1] sm:$0xff] %v4_v0 }

// kernel: tile.19
= control target key start
LH: loop header
LB: loop body
LE: loop exit
PB: predicated region body
PF: predicated region fallthrough
CT: control target
= control target key end

     0   :  { %s67_s10 = smov 112   ;;  %s68_s11 = smov 80   ;;  %vm3_vm0 = vcmask 130048   ;;  %vm9_vm1 = vcmask 1048448   ;;  %vm15_vm2 = vcmask 917248   ;;  %vm21_vm3 = vcmask 786048   ;;  %s111_s0 = inlined_call_operand.vmem [shape: f32[8,16], index: 0, kind: input, shape index: {}]   ;;  %s112_s1 = inlined_call_operand.vmem [shape: f32[1,128], index: 1, kind: output, shape index: {}]  }
   0x1   :  { %v53_v0 = vld [vmem:[%s111_s0 + $0x7] sm:$0x1]   ;;  %v55_v1 = vld [vmem:[%s111_s0 + $0x5] sm:$0x1]   ;;  %v54_v2 = vld [vmem:[%s111_s0 + $0x6] sm:$0x1]  }
   0x2   :  { %7 = vrot.lane.b32.xlu0 %v53_v0, %s67_s10  ;;  %19 = vrot.lane.b32.xlu1 %v55_v1, %s68_s11  ;;  %v56_v3 = vld [vmem:[%s111_s0 + $0x4] sm:$0x1]   ;;  %v2_v4 = vld [vmem:[%s111_s0] sm:$0x1]   ;;  %s69_s18 = smov 96   ;;  %s70_s19 = smov 64  }
   0x3   :  { %4 = vst.msk [vmem:[#allocation0] sm:$0x1] %vm3_vm0, %v2_v4   ;;  %v57_v5 = vld [vmem:[%s111_s0 + $0x3] sm:$0x1]   ;;  %v58_v6 = vld [vmem:[%s111_s0 + $0x2] sm:$0x1]  }
   0x4   :  { %s71_s24 = smov 48   ;;  %s72_s25 = smov 32   ;;  %v59_v7 = vld [vmem:[%s111_s0 + $0x1] sm:$0x1]   ;;  %vm27_vm4 = vcmask 654848   ;;  %vm33_vm5 = vcmask 523648  }
   0x5   :  { %s73_s0 = smov 16   ;;  %vm39_vm6 = vcmask 392448   ;;  %vm45_vm7 = vcmask 261248  }
   0x6   :  { %13 = vrot.lane.b32.xlu0 %v54_v2, %s69_s18  ;;  %25 = vrot.lane.b32.xlu1 %v56_v3, %s70_s19 }
   0xa   :  { %31 = vrot.lane.b32.xlu0 %v57_v5, %s71_s24  ;;  %37 = vrot.lane.b32.xlu1 %v58_v6, %s72_s25 }
   0xe   :  { %43 = vrot.lane.b32.xlu0 %v59_v7, %s73_s0 }
  0x74   :  { %v8_v8 = vpop.permute.xlu0 %7   ;;  %v20_v9 = vpop.permute.xlu1 %19  }
  0x75   :  { %10 = vst.msk [vmem:[#allocation0] sm:$0x1] %vm9_vm1, %v8_v8  }
  0x78   :  { %v14_v10 = vpop.permute.xlu0 %13   ;;  %v26_v11 = vpop.permute.xlu1 %25  }
  0x79   :  { %16 = vst.msk [vmem:[#allocation0] sm:$0x1] %vm15_vm2, %v14_v10  }
  0x7a   :  { %22 = vst.msk [vmem:[#allocation0] sm:$0x1] %vm21_vm3, %v20_v9  }
  0x7b   :  { %28 = vst.msk [vmem:[#allocation0] sm:$0x1] %vm27_vm4, %v26_v11  }
  0x7c   :  { %v32_v12 = vpop.permute.xlu0 %31   ;;  %v38_v13 = vpop.permute.xlu1 %37  }
  0x7d   :  { %34 = vst.msk [vmem:[#allocation0] sm:$0x1] %vm33_vm5, %v32_v12  }
  0x7e   :  { %40 = vst.msk [vmem:[#allocation0] sm:$0x1] %vm39_vm6, %v38_v13  }
  0x80   :  { %v44_v14 = vpop.permute.xlu0 %43  }
  0x81   :  { %46 = vst.msk [vmem:[#allocation0] sm:$0x1] %vm45_vm7, %v44_v14  }
  0x88   :  { %v50_v15 = vld [vmem:[#allocation0] sm:$0x1] }
  0x89   :  { %52 = vst [vmem:[%s112_s1] sm:$0x1] %v50_v15 }

// kernel: conv3d_block_forward.3
= control target key start
LH: loop header
LB: loop body
LE: loop exit
PB: predicated region body
PF: predicated region fallthrough
CT: control target
= control target key end

     0   :  { %s254_s0 = inlined_call_operand.vmem [shape: f32[128,128], index: 0, kind: input, shape index: {}, may-alias: {0,3}]   ;;  %s255_s1 = inlined_call_operand.vmem [shape: f32[1,128], index: 1, kind: input, shape index: {}]   ;;  %s256_s2 = inlined_call_operand.vmem [shape: f32[1,128], index: 2, kind: input, shape index: {}]   ;;  %s257_s3 = inlined_call_operand.vmem [shape: f32[128,128], index: 3, kind: output, shape index: {}, may-alias: {0,3}]  }
   0x1   :  { %v14_v0 = vld [vmem:[%s254_s0] sm:$0xff]  ;;  %v15_v4 = vld [vmem:[%s254_s0 + $0x8] sm:$0xff]  ;;  %v16_v5 = vld [vmem:[%s254_s0 + $0x10] sm:$0xff] }
   0x2   :  { %v112_v1 = vld [vmem:[%s255_s1] ss:$0 sm:$0xff]  ;;  %v17_v6 = vld [vmem:[%s254_s0 + $0x18] sm:$0xff]  ;;  %v19_v11 = vld [vmem:[%s254_s0 + $0x28] sm:$0xff] }
   0x3   :  { %v143_v2 = vld [vmem:[%s256_s2] ss:$0 sm:$0xff]  ;;  %v37_v3 = vmul.f32 %v112_v1, %v14_v0  ;;  %v38_v7 = vmul.f32 %v112_v1, %v15_v4  ;;  %v39_v8 = vmul.f32 %v112_v1, %v16_v5  ;;  %v40_v9 = vmul.f32 %v112_v1, %v17_v6  ;;  %v20_v12 = vld [vmem:[%s254_s0 + $0x30] sm:$0xff]  ;;  %v21_v17 = vld [vmem:[%s254_s0 + $0x38] sm:$0xff] }
   0x4   :  { %v18_v10 = vld [vmem:[%s254_s0 + $0x20] sm:$0xff]  ;;  %v42_v15 = vmul.f32 %v112_v1, %v19_v11  ;;  %v43_v16 = vmul.f32 %v112_v1, %v20_v12  ;;  %v44_v21 = vmul.f32 %v112_v1, %v21_v17  ;;  %v23_v27 = vld [vmem:[%s254_s0 + $0x48] sm:$0xff]  ;;  %v24_v28 = vld [vmem:[%s254_s0 + $0x50] sm:$0xff] }
   0x5   :  { %v60_v13 = vadd.f32 %v143_v2, %v37_v3  ;;  %v41_v14 = vmul.f32 %v112_v1, %v18_v10  ;;  %v61_v18 = vadd.f32 %v143_v2, %v38_v7  ;;  %v62_v19 = vadd.f32 %v143_v2, %v39_v8  ;;  %v22_v22 = vld [vmem:[%s254_s0 + $0x40] sm:$0xff]  ;;  %v25_v29 = vld [vmem:[%s254_s0 + $0x58] sm:$0xff]  ;;  %v27_v35 = vld [vmem:[%s254_s0 + $0x68] sm:$0xff] }
   0x6   :  { %v63_v20 = vadd.f32 %v143_v2, %v40_v9  ;;  %v65_v25 = vadd.f32 %v143_v2, %v42_v15  ;;  %v66_v26 = vadd.f32 %v143_v2, %v43_v16  ;;  %v67_v33 = vadd.f32 %v143_v2, %v44_v21  ;;  %v26_v34 = vld [vmem:[%s254_s0 + $0x60] sm:$0xff]  ;;  %v28_v36 = vld [vmem:[%s254_s0 + $0x70] sm:$0xff] }
   0x7   :  { %v76_v23 = vmax.f32 %v60_v13, 0.0  ;;  %v64_v24 = vadd.f32 %v143_v2, %v41_v14  ;;  %v77_v30 = vmax.f32 %v61_v18, 0.0  ;;  %v78_v31 = vmax.f32 %v62_v19, 0.0 }
   0x8   :  { %v79_v32 = vmax.f32 %v63_v20, 0.0  ;;  %v81_v38 = vmax.f32 %v65_v25, 0.0  ;;  %v82_v39 = vmax.f32 %v66_v26, 0.0  ;;  %v45_v40 = vmul.f32 %v112_v1, %v22_v22 }
   0x9   :  { %92 = vst [vmem:[%s257_s3] sm:$0xff] %v76_v23  ;;  %v80_v37 = vmax.f32 %v64_v24, 0.0  ;;  %v83_v42 = vmax.f32 %v67_v33, 0.0  ;;  %v46_v43 = vmul.f32 %v112_v1, %v23_v27  ;;  %v47_v44 = vmul.f32 %v112_v1, %v24_v28 }
   0xa   :  { %v48_v45 = vmul.f32 %v112_v1, %v25_v29  ;;  %v68_v46 = vadd.f32 %v143_v2, %v45_v40  ;;  %v49_v47 = vmul.f32 %v112_v1, %v26_v34  ;;  %v50_v48 = vmul.f32 %v112_v1, %v27_v35 }
   0xb   :  { %v51_v49 = vmul.f32 %v112_v1, %v28_v36  ;;  %v69_v50 = vadd.f32 %v143_v2, %v46_v43  ;;  %v70_v51 = vadd.f32 %v143_v2, %v47_v44 }
   0xc   :  { %v71_v52 = vadd.f32 %v143_v2, %v48_v45  ;;  %v84_v54 = vmax.f32 %v68_v46, 0.0  ;;  %v72_v55 = vadd.f32 %v143_v2, %v49_v47  ;;  %v73_v56 = vadd.f32 %v143_v2, %v50_v48 }
   0xd   :  { %v74_v57 = vadd.f32 %v143_v2, %v51_v49  ;;  %v85_v58 = vmax.f32 %v69_v50, 0.0  ;;  %v86_v59 = vmax.f32 %v70_v51, 0.0 }
   0xe   :  { %v87_v60 = vmax.f32 %v71_v52, 0.0  ;;  %v88_v62 = vmax.f32 %v72_v55, 0.0  ;;  %v89_v63 = vmax.f32 %v73_v56, 0.0 }
   0xf   :  { %v90_v0 = vmax.f32 %v74_v57, 0.0 }
  0x10   :  { %v29_v41 = vld [vmem:[%s254_s0 + $0x78] sm:$0xff] }
  0x11   :  { %93 = vst [vmem:[%s257_s3 + $0x8] sm:$0xff] %v77_v30  ;;  %94 = vst [vmem:[%s257_s3 + $0x10] sm:$0xff] %v78_v31  ;;  %v52_v53 = vmul.f32 %v112_v1, %v29_v41 }
  0x12   :  { %95 = vst [vmem:[%s257_s3 + $0x18] sm:$0xff] %v79_v32  ;;  %96 = vst [vmem:[%s257_s3 + $0x20] sm:$0xff] %v80_v37 }
  0x13   :  { %97 = vst [vmem:[%s257_s3 + $0x28] sm:$0xff] %v81_v38  ;;  %98 = vst [vmem:[%s257_s3 + $0x30] sm:$0xff] %v82_v39  ;;  %v75_v61 = vadd.f32 %v143_v2, %v52_v53 }
  0x14   :  { %99 = vst [vmem:[%s257_s3 + $0x38] sm:$0xff] %v83_v42  ;;  %100 = vst [vmem:[%s257_s3 + $0x40] sm:$0xff] %v84_v54 }
  0x15   :  { %101 = vst [vmem:[%s257_s3 + $0x48] sm:$0xff] %v85_v58  ;;  %102 = vst [vmem:[%s257_s3 + $0x50] sm:$0xff] %v86_v59  ;;  %v91_v1 = vmax.f32 %v75_v61, 0.0 }
  0x16   :  { %103 = vst [vmem:[%s257_s3 + $0x58] sm:$0xff] %v87_v60  ;;  %104 = vst [vmem:[%s257_s3 + $0x60] sm:$0xff] %v88_v62 }
  0x17   :  { %105 = vst [vmem:[%s257_s3 + $0x68] sm:$0xff] %v89_v63  ;;  %106 = vst [vmem:[%s257_s3 + $0x70] sm:$0xff] %v90_v0 }
  0x18   :  { %107 = vst [vmem:[%s257_s3 + $0x78] sm:$0xff] %v91_v1 }

// kernel: conv3d_block_forward.2
= control target key start
LH: loop header
LB: loop body
LE: loop exit
PB: predicated region body
PF: predicated region fallthrough
CT: control target
= control target key end

     0   :  { %s1093_s1 = inlined_call_operand.vmem [shape: f32[384,128], index: 1, kind: input, shape index: {}]   ;;  %s1094_s0 = inlined_call_operand.vmem [shape: f32[128,384], index: 0, kind: input, shape index: {}]   ;;  %s1095_s2 = inlined_call_operand.vmem [shape: f32[128,128], index: 2, kind: output, shape index: {0}]   ;;  %s1096_s3 = inlined_call_operand.vmem [shape: f32[1,128], index: 3, kind: output, shape index: {1}]   ;;  %s1097_s4 = inlined_call_operand.vmem [shape: f32[1,128], index: 4, kind: output, shape index: {2}]  }
   0x1   :  { %v78_v0 = vld [vmem:[%s1093_s1 + $0x80] sm:$0xff]  ;;  %v79_v1 = vld [vmem:[%s1093_s1 + $0x88] sm:$0xff]  ;;  %v80_v9 = vld [vmem:[%s1093_s1 + $0x90] sm:$0xff] }
   0x2   :  { %v62_v2 = vld [vmem:[%s1093_s1] sm:$0xff]  ;;  %v656_v3 = vpack.c.bf16 %v79_v1, %v78_v0  ;;  %v63_v4 = vld [vmem:[%s1093_s1 + $0x8] sm:$0xff]  ;;  %v81_v10 = vld [vmem:[%s1093_s1 + $0x98] sm:$0xff] }
   0x3   :  { %v94_v5 = vld [vmem:[%s1093_s1 + $0x100] sm:$0xff]  ;;  %v95_v6 = vld [vmem:[%s1093_s1 + $0x108] sm:$0xff]  ;;  %v658_v7 = vpack.c.bf16 %v63_v4, %v62_v2  ;;  %v64_v11 = vld [vmem:[%s1093_s1 + $0x10] sm:$0xff]  ;;  %v660_v12 = vpack.c.bf16 %v81_v10, %v80_v9 }
   0x4   :  { %v688_v8 = vpack.c.bf16 %v95_v6, %v94_v5  ;;  %657 = vmatprep.subr.bf16.mxu0 %v656_v3  ;;  %v65_v13 = vld [vmem:[%s1093_s1 + $0x18] sm:$0xff]  ;;  %v96_v14 = vld [vmem:[%s1093_s1 + $0x110] sm:$0xff]  ;;  %v82_v18 = vld [vmem:[%s1093_s1 + $0xa0] sm:$0xff] }
   0x5   :  { %v97_v15 = vld [vmem:[%s1093_s1 + $0x118] sm:$0xff]  ;;  %659 = vmatpush3.bf16.msra.mxu0 %v658_v7  ;;  %v662_v16 = vpack.c.bf16 %v65_v13, %v64_v11  ;;  %v83_v19 = vld [vmem:[%s1093_s1 + $0xa8] sm:$0xff]  ;;  %v66_v20 = vld [vmem:[%s1093_s1 + $0x20] sm:$0xff] }
   0x6   :  { %689 = vmatprep.subr.bf16.mxu1 %v688_v8  ;;  %v692_v17 = vpack.c.bf16 %v97_v15, %v96_v14  ;;  %661 = vmatprep.subr.bf16.mxu0 %v660_v12  ;;  %v664_v21 = vpack.c.bf16 %v83_v19, %v82_v18  ;;  %v67_v22 = vld [vmem:[%s1093_s1 + $0x28] sm:$0xff]  ;;  %v98_v23 = vld [vmem:[%s1093_s1 + $0x120] sm:$0xff]  ;;  %v84_v26 = vld [vmem:[%s1093_s1 + $0xb0] sm:$0xff] }
   0x7   :  { %691 = vmatpush3.bf16.msra.mxu1 %v688_v8  ;;  %v99_v24 = vld [vmem:[%s1093_s1 + $0x128] sm:$0xff]  ;;  %v85_v27 = vld [vmem:[%s1093_s1 + $0xb8] sm:$0xff]  ;;  %v100_v28 = vld [vmem:[%s1093_s1 + $0x130] sm:$0xff]  ;;  %v666_v30 = vpack.c.bf16 %v67_v22, %v66_v20 }
   0x8   :  { %693 = vmatprep.subr.bf16.mxu1 %v692_v17  ;;  %v696_v25 = vpack.c.bf16 %v99_v24, %v98_v23  ;;  %v101_v29 = vld [vmem:[%s1093_s1 + $0x138] sm:$0xff]  ;;  %v668_v31 = vpack.c.bf16 %v85_v27, %v84_v26  ;;  %v68_v32 = vld [vmem:[%s1093_s1 + $0x30] sm:$0xff]  ;;  %v86_v35 = vld [vmem:[%s1093_s1 + $0xc0] sm:$0xff] }
   0x9   :  { %663 = vmatpush3.bf16.msra.mxu0 %v662_v16  ;;  %v69_v33 = vld [vmem:[%s1093_s1 + $0x38] sm:$0xff]  ;;  %v700_v34 = vpack.c.bf16 %v101_v29, %v100_v28  ;;  %v87_v36 = vld [vmem:[%s1093_s1 + $0xc8] sm:$0xff]  ;;  %v102_v37 = vld [vmem:[%s1093_s1 + $0x140] sm:$0xff] }
   0xa   :  { %665 = vmatprep.subr.bf16.mxu0 %v664_v21  ;;  %v103_v38 = vld [vmem:[%s1093_s1 + $0x148] sm:$0xff]  ;;  %v670_v39 = vpack.c.bf16 %v69_v33, %v68_v32  ;;  %v672_v40 = vpack.c.bf16 %v87_v36, %v86_v35  ;;  %v70_v41 = vld [vmem:[%s1093_s1 + $0x40] sm:$0xff]  ;;  %v88_v44 = vld [vmem:[%s1093_s1 + $0xd0] sm:$0xff] }
   0xb   :  { %695 = vmatpush3.bf16.msra.mxu1 %v692_v17  ;;  %v71_v42 = vld [vmem:[%s1093_s1 + $0x48] sm:$0xff]  ;;  %v704_v43 = vpack.c.bf16 %v103_v38, %v102_v37  ;;  %v89_v45 = vld [vmem:[%s1093_s1 + $0xd8] sm:$0xff]  ;;  %v104_v46 = vld [vmem:[%s1093_s1 + $0x150] sm:$0xff] }
   0xc   :  { %697 = vmatprep.subr.bf16.mxu1 %v696_v25  ;;  %v105_v47 = vld [vmem:[%s1093_s1 + $0x158] sm:$0xff]  ;;  %v674_v48 = vpack.c.bf16 %v71_v42, %v70_v41  ;;  %v15_v49 = vld [vmem:[%s1094_s0 + $0x8] sm:$0xff]  ;;  %v16_v50 = vld [vmem:[%s1094_s0 + $0x10] sm:$0xff]  ;;  %v676_v51 = vpack.c.bf16 %v89_v45, %v88_v44 }
   0xd   :  { %667 = vmatpush3.bf16.msra.mxu0 %v666_v30  ;;  %v72_v52 = vld [vmem:[%s1093_s1 + $0x50] sm:$0xff]  ;;  %v73_v53 = vld [vmem:[%s1093_s1 + $0x58] sm:$0xff]  ;;  %v708_v54 = vpack.c.bf16 %v105_v47, %v104_v46  ;;  %v90_v55 = vld [vmem:[%s1093_s1 + $0xe0] sm:$0xff]  ;;  %174 = vmatprep.mubr.f32.mxu0 %v15_v49 }
   0xe   :  { %669 = vmatprep.subr.bf16.mxu0 %v668_v31  ;;  %v91_v56 = vld [vmem:[%s1093_s1 + $0xe8] sm:$0xff]  ;;  %v106_v57 = vld [vmem:[%s1093_s1 + $0x160] sm:$0xff]  ;;  %632 = vmatprep.mubr.f32.mxu1 %v16_v50  ;;  %v678_v59 = vpack.c.bf16 %v73_v53, %v72_v52  ;;  %v92_v0 = vld [vmem:[%s1093_s1 + $0xf0] sm:$0xff] }
   0xf   :  { %699 = vmatpush3.bf16.msra.mxu1 %v696_v25  ;;  %v107_v58 = vld [vmem:[%s1093_s1 + $0x168] sm:$0xff]  ;;  %v680_v60 = vpack.c.bf16 %v91_v56, %v90_v55  ;;  %v74_v61 = vld [vmem:[%s1093_s1 + $0x60] sm:$0xff]  ;;  %v93_v1 = vld [vmem:[%s1093_s1 + $0xf8] sm:$0xff] }
  0x10   :  { %701 = vmatprep.subr.bf16.mxu1 %v700_v34  ;;  %v75_v62 = vld [vmem:[%s1093_s1 + $0x68] sm:$0xff]  ;;  %v712_v63 = vpack.c.bf16 %v107_v58, %v106_v57  ;;  %v108_v2 = vld [vmem:[%s1093_s1 + $0x170] sm:$0xff]  ;;  %v109_v3 = vld [vmem:[%s1093_s1 + $0x178] sm:$0xff]  ;;  %v684_v5 = vpack.c.bf16 %v93_v1, %v92_v0 }
  0x11   :  { %671 = vmatpush3.bf16.msra.mxu0 %v670_v39  ;;  %v682_v4 = vpack.c.bf16 %v75_v62, %v74_v61  ;;  %v76_v6 = vld [vmem:[%s1093_s1 + $0x70] sm:$0xff]  ;;  %v77_v7 = vld [vmem:[%s1093_s1 + $0x78] sm:$0xff]  ;;  %v716_v8 = vpack.c.bf16 %v109_v3, %v108_v2  ;;  %v14_v10 = vld [vmem:[%s1094_s0] sm:$0xff] }
  0x12   :  { %673 = vmatprep.subr.bf16.mxu0 %v672_v40  ;;  %v686_v9 = vpack.c.bf16 %v77_v7, %v76_v6  ;;  %v19_v11 = vld [vmem:[%s1094_s0 + $0x28] sm:$0xff]  ;;  %v18_v12 = vld [vmem:[%s1094_s0 + $0x20] sm:$0xff]  ;;  %v17_v14 = vld [vmem:[%s1094_s0 + $0x18] sm:$0xff] }
  0x13   :  { %703 = vmatpush3.bf16.msra.mxu1 %v700_v34  ;;  %v22_v13 = vld [vmem:[%s1094_s0 + $0x40] sm:$0xff]  ;;  %v21_v15 = vld [vmem:[%s1094_s0 + $0x38] sm:$0xff]  ;;  %v28_v17 = vld [vmem:[%s1094_s0 + $0x70] sm:$0xff] }
  0x14   :  { %705 = vmatprep.subr.bf16.mxu1 %v704_v43  ;;  %v25_v16 = vld [vmem:[%s1094_s0 + $0x58] sm:$0xff]  ;;  %v20_v18 = vld [vmem:[%s1094_s0 + $0x30] sm:$0xff]  ;;  %v31_v20 = vld [vmem:[%s1094_s0 + $0x88] sm:$0xff] }
  0x15   :  { %675 = vmatpush3.bf16.msra.mxu0 %v674_v48  ;;  %v24_v19 = vld [vmem:[%s1094_s0 + $0x50] sm:$0xff]  ;;  %v34_v21 = vld [vmem:[%s1094_s0 + $0xa0] sm:$0xff]  ;;  %v23_v22 = vld [vmem:[%s1094_s0 + $0x48] sm:$0xff] }
  0x16   :  { %677 = vmatprep.subr.bf16.mxu0 %v676_v51  ;;  %v27_v23 = vld [vmem:[%s1094_s0 + $0x68] sm:$0xff]  ;;  %v37_v24 = vld [vmem:[%s1094_s0 + $0xb8] sm:$0xff]  ;;  %v40_v25 = vld [vmem:[%s1094_s0 + $0xd0] sm:$0xff] }
  0x17   :  { %707 = vmatpush3.bf16.msra.mxu1 %v704_v43  ;;  %v26_v26 = vld [vmem:[%s1094_s0 + $0x60] sm:$0xff]  ;;  %v43_v28 = vld [vmem:[%s1094_s0 + $0xe8] sm:$0xff]  ;;  %v29_v30 = vld [vmem:[%s1094_s0 + $0x78] sm:$0xff] }
  0x18   :  { %709 = vmatprep.subr.bf16.mxu1 %v708_v54  ;;  %v30_v27 = vld [vmem:[%s1094_s0 + $0x80] sm:$0xff]  ;;  %v33_v31 = vld [vmem:[%s1094_s0 + $0x98] sm:$0xff]  ;;  %v52_v33 = vld [vmem:[%s1094_s0 + $0x130] sm:$0xff] }
  0x19   :  { %679 = vmatpush3.bf16.msra.mxu0 %v678_v59  ;;  %v46_v29 = vld [vmem:[%s1094_s0 + $0x100] sm:$0xff]  ;;  %v49_v32 = vld [vmem:[%s1094_s0 + $0x118] sm:$0xff]  ;;  %v32_v34 = vld [vmem:[%s1094_s0 + $0x90] sm:$0xff] }
  0x1a   :  { %681 = vmatprep.subr.bf16.mxu0 %v680_v60  ;;  %v36_v35 = vld [vmem:[%s1094_s0 + $0xb0] sm:$0xff]  ;;  %v55_v36 = vld [vmem:[%s1094_s0 + $0x148] sm:$0xff]  ;;  %v58_v37 = vld [vmem:[%s1094_s0 + $0x160] sm:$0xff] }
  0x1b   :  { %711 = vmatpush3.bf16.msra.mxu1 %v708_v54  ;;  %v35_v38 = vld [vmem:[%s1094_s0 + $0xa8] sm:$0xff]  ;;  %v61_v40 = vld [vmem:[%s1094_s0 + $0x178] sm:$0xff]  ;;  %v38_v41 = vld [vmem:[%s1094_s0 + $0xc0] sm:$0xff] }
  0x1c   :  { %713 = vmatprep.subr.bf16.mxu1 %v712_v63  ;;  %v39_v39 = vld [vmem:[%s1094_s0 + $0xc8] sm:$0xff]  ;;  %v42_v42 = vld [vmem:[%s1094_s0 + $0xe0] sm:$0xff]  ;;  %v41_v43 = vld [vmem:[%s1094_s0 + $0xd8] sm:$0xff] }
  0x1d   :  { %683 = vmatpush3.bf16.msra.mxu0 %v682_v4  ;;  %v45_v44 = vld [vmem:[%s1094_s0 + $0xf8] sm:$0xff]  ;;  %v44_v45 = vld [vmem:[%s1094_s0 + $0xf0] sm:$0xff]  ;;  %v47_v47 = vld [vmem:[%s1094_s0 + $0x108] sm:$0xff] }
  0x1e   :  { %685 = vmatprep.subr.bf16.mxu0 %v684_v5  ;;  %v48_v46 = vld [vmem:[%s1094_s0 + $0x110] sm:$0xff]  ;;  %v51_v48 = vld [vmem:[%s1094_s0 + $0x128] sm:$0xff]  ;;  %v50_v49 = vld [vmem:[%s1094_s0 + $0x120] sm:$0xff] }
  0x1f   :  { %715 = vmatpush3.bf16.msra.mxu1 %v712_v63  ;;  %v54_v50 = vld [vmem:[%s1094_s0 + $0x140] sm:$0xff]  ;;  %v53_v51 = vld [vmem:[%s1094_s0 + $0x138] sm:$0xff]  ;;  %v56_v53 = vld [vmem:[%s1094_s0 + $0x150] sm:$0xff] }
  0x20   :  { %717 = vmatprep.subr.bf16.mxu1 %v716_v8  ;;  %v57_v52 = vld [vmem:[%s1094_s0 + $0x158] sm:$0xff]  ;;  %v60_v54 = vld [vmem:[%s1094_s0 + $0x170] sm:$0xff]  ;;  %v59_v55 = vld [vmem:[%s1094_s0 + $0x168] sm:$0xff] }
  0x21   :  { %687 = vmatpush3.bf16.msra.mxu0 %v686_v9 }
  0x23   :  { %719 = vmatpush3.bf16.msra.mxu1 %v716_v8 }
  0x24   :  { %175 = vmatmul.mubr.f32.vlgmr.msra.gmra.mrb[0].mxu0 %v14_v10 }
  0x25   :  { %179 = vmatprep.mubr.f32.mxu0 %v18_v12 }
  0x26   :  { %633 = vmatmul.mubr.f32.vlgmr.msra.gmra.mrb[0].mxu1 %v19_v11 }
  0x27   :  { %635 = vmatprep.mubr.f32.mxu1 %v22_v13 }
  0x28   :  { %180 = vmatmul.mubr.f32.gmra.mrb[2].mxu0 %v17_v14 }
  0x29   :  { %184 = vmatprep.mubr.f32.mxu0 %v21_v15 }
  0x2a   :  { %636 = vmatmul.mubr.f32.gmra.mrb[2].mxu1 %v25_v16 }
  0x2b   :  { %638 = vmatprep.mubr.f32.mxu1 %v28_v17 }
  0x2c   :  { %185 = vmatmul.mubr.f32.gmra.mrb[4].mxu0 %v20_v18 }
  0x2d   :  { %189 = vmatprep.mubr.f32.mxu0 %v24_v19 }
  0x2e   :  { %639 = vmatmul.mubr.f32.gmra.mrb[4].mxu1 %v31_v20 }
  0x2f   :  { %641 = vmatprep.mubr.f32.mxu1 %v34_v21 }
  0x30   :  { %190 = vmatmul.mubr.f32.gmra.mrb[6].mxu0 %v23_v22 }
  0x31   :  { %194 = vmatprep.mubr.f32.mxu0 %v27_v23 }
  0x32   :  { %642 = vmatmul.mubr.f32.gmra.mrb[6].mxu1 %v37_v24 }
  0x33   :  { %644 = vmatprep.mubr.f32.mxu1 %v40_v25 }
  0x34   :  { %195 = vmatmul.mubr.f32.gmra.mrb[8].mxu0 %v26_v26 }
  0x35   :  { %199 = vmatprep.mubr.f32.mxu0 %v30_v27 }
  0x36   :  { %645 = vmatmul.mubr.f32.gmra.mrb[8].mxu1 %v43_v28 }
  0x37   :  { %647 = vmatprep.mubr.f32.mxu1 %v46_v29 }
  0x38   :  { %200 = vmatmul.mubr.f32.gmra.mrb[10].mxu0 %v29_v30 }
  0x39   :  { %204 = vmatprep.mubr.f32.mxu0 %v33_v31 }
  0x3a   :  { %648 = vmatmul.mubr.f32.gmra.mrb[10].mxu1 %v49_v32 }
  0x3b   :  { %650 = vmatprep.mubr.f32.mxu1 %v52_v33 }
  0x3c   :  { %205 = vmatmul.mubr.f32.gmra.mrb[12].mxu0 %v32_v34 }
  0x3d   :  { %209 = vmatprep.mubr.f32.mxu0 %v36_v35 }
  0x3e   :  { %651 = vmatmul.mubr.f32.gmra.mrb[12].mxu1 %v55_v36 }
  0x3f   :  { %653 = vmatprep.mubr.f32.mxu1 %v58_v37 }
  0x40   :  { %210 = vmatmul.mubr.f32.gmra.mrb[14].mxu0 %v35_v38 }
  0x41   :  { %214 = vmatprep.mubr.f32.mxu0 %v39_v39 }
  0x42   :  { %654 = vmatmul.mubr.f32.gmra.mrb[14].mxu1 %v61_v40 }
  0x44   :  { %215 = vmatmul.mubr.f32.gmra.mrb[16].mxu0 %v38_v41 }
  0x45   :  { %219 = vmatprep.mubr.f32.mxu0 %v42_v42 }
  0x48   :  { %220 = vmatmul.mubr.f32.gmra.mrb[18].mxu0 %v41_v43 }
  0x49   :  { %224 = vmatprep.mubr.f32.mxu0 %v45_v44 }
  0x4c   :  { %225 = vmatmul.mubr.f32.gmra.mrb[20].mxu0 %v44_v45 }
  0x4d   :  { %229 = vmatprep.mubr.f32.mxu0 %v48_v46 }
  0x50   :  { %230 = vmatmul.mubr.f32.gmra.mrb[22].mxu0 %v47_v47 }
  0x51   :  { %234 = vmatprep.mubr.f32.mxu0 %v51_v48 }
  0x54   :  { %235 = vmatmul.mubr.f32.gmra.mrb[24].mxu0 %v50_v49 }
  0x55   :  { %239 = vmatprep.mubr.f32.mxu0 %v54_v50 }
  0x58   :  { %240 = vmatmul.mubr.f32.gmra.mrb[26].mxu0 %v53_v51 }
  0x59   :  { %244 = vmatprep.mubr.f32.mxu0 %v57_v52 }
  0x5c   :  { %245 = vmatmul.mubr.f32.gmra.mrb[28].mxu0 %v56_v53 }
  0x5d   :  { %249 = vmatprep.mubr.f32.mxu0 %v60_v54 }
  0x60   :  { %250 = vmatmul.mubr.f32.gmra.mrb[30].mxu0 %v59_v55 }
  0xf7   :  { %v520_v56 = vpop.f32.mrb[0].mxu0 }
  0xf8   :  { %v521_v57 = vpop.f32.mrb[1].mxu0 }
  0xf9   :  { %v634_v58 = vpop.f32.mrb[0].mxu1  ;;  %v522_v59 = vadd.f32 %v521_v57, %v520_v56 }
  0xfa   :  { %v321_v60 = vpop.f32.mrb[1].mxu1 }
  0xfb   :  { %v322_v61 = vadd.f32 %v522_v59, %v321_v60  ;;  %v523_v62 = vpop.f32.mrb[2].mxu0 }
  0xfc   :  { %v524_v63 = vpop.f32.mrb[3].mxu0 }
  0xfd   :  { %v637_v0 = vpop.f32.mrb[2].mxu1  ;;  %400 = vst [vmem:[%s1095_s2] sm:$0xff] %v322_v61  ;;  %v525_v1 = vadd.f32 %v524_v63, %v523_v62  ;;  %v438_v7 = vmul.f32 %v322_v61, %v322_v61 }
  0xfe   :  { %v331_v2 = vpop.f32.mrb[3].mxu1 }
  0xff   :  { %v327_v3 = vadd.f32 %v634_v58, %v525_v1  ;;  %v526_v4 = vpop.f32.mrb[4].mxu0 }
 0x100   :  { %v527_v5 = vpop.f32.mrb[5].mxu0 }
 0x101   :  { %v640_v6 = vpop.f32.mrb[4].mxu1  ;;  %401 = vst [vmem:[%s1095_s2 + $0x8] sm:$0xff] %v327_v3  ;;  %v439_v8 = vmul.f32 %v327_v3, %v327_v3  ;;  %v528_v9 = vadd.f32 %v527_v5, %v526_v4  ;;  %v416_v10 = vadd.f32 %v327_v3, %v322_v61 }
 0x102   :  { %v341_v11 = vpop.f32.mrb[5].mxu1 }
 0x103   :  { %v332_v12 = vadd.f32 %v528_v9, %v331_v2  ;;  %v454_v13 = vadd.f32 %v439_v8, %v438_v7  ;;  %v529_v14 = vpop.f32.mrb[6].mxu0 }
 0x104   :  { %v530_v15 = vpop.f32.mrb[7].mxu0 }
 0x105   :  { %v643_v16 = vpop.f32.mrb[6].mxu1  ;;  %402 = vst [vmem:[%s1095_s2 + $0x10] sm:$0xff] %v332_v12  ;;  %v417_v17 = vadd.f32 %v416_v10, %v332_v12  ;;  %v440_v18 = vmul.f32 %v332_v12, %v332_v12  ;;  %v531_v19 = vadd.f32 %v530_v15, %v529_v14 }
 0x106   :  { %v351_v20 = vpop.f32.mrb[7].mxu1 }
 0x107   :  { %v455_v21 = vadd.f32 %v454_v13, %v440_v18  ;;  %v337_v22 = vadd.f32 %v637_v0, %v531_v19  ;;  %v532_v23 = vpop.f32.mrb[8].mxu0 }
 0x108   :  { %v533_v24 = vpop.f32.mrb[9].mxu0 }
 0x109   :  { %v646_v25 = vpop.f32.mrb[8].mxu1  ;;  %403 = vst [vmem:[%s1095_s2 + $0x18] sm:$0xff] %v337_v22  ;;  %v441_v26 = vmul.f32 %v337_v22, %v337_v22  ;;  %v534_v27 = vadd.f32 %v533_v24, %v532_v23  ;;  %v418_v28 = vadd.f32 %v417_v17, %v337_v22 }
 0x10a   :  { %v361_v29 = vpop.f32.mrb[9].mxu1 }
 0x10b   :  { %v342_v30 = vadd.f32 %v534_v27, %v341_v11  ;;  %v456_v31 = vadd.f32 %v455_v21, %v441_v26  ;;  %v535_v32 = vpop.f32.mrb[10].mxu0 }
 0x10c   :  { %v536_v33 = vpop.f32.mrb[11].mxu0 }
 0x10d   :  { %v649_v34 = vpop.f32.mrb[10].mxu1  ;;  %404 = vst [vmem:[%s1095_s2 + $0x20] sm:$0xff] %v342_v30  ;;  %v419_v35 = vadd.f32 %v418_v28, %v342_v30  ;;  %v442_v36 = vmul.f32 %v342_v30, %v342_v30  ;;  %v537_v37 = vadd.f32 %v536_v33, %v535_v32 }
 0x10e   :  { %v371_v38 = vpop.f32.mrb[11].mxu1 }
 0x10f   :  { %v457_v39 = vadd.f32 %v456_v31, %v442_v36  ;;  %v347_v40 = vadd.f32 %v640_v6, %v537_v37  ;;  %v538_v41 = vpop.f32.mrb[12].mxu0 }
 0x110   :  { %v539_v42 = vpop.f32.mrb[13].mxu0 }
 0x111   :  { %v1048_v43 = vpop.f32.mrb[12].mxu1  ;;  %405 = vst [vmem:[%s1095_s2 + $0x28] sm:$0xff] %v347_v40  ;;  %v443_v44 = vmul.f32 %v347_v40, %v347_v40  ;;  %v540_v45 = vadd.f32 %v539_v42, %v538_v41  ;;  %v420_v46 = vadd.f32 %v419_v35, %v347_v40 }
 0x112   :  { %v381_v47 = vpop.f32.mrb[13].mxu1 }
 0x113   :  { %v352_v48 = vadd.f32 %v540_v45, %v351_v20  ;;  %v458_v49 = vadd.f32 %v457_v39, %v443_v44  ;;  %v541_v50 = vpop.f32.mrb[14].mxu0 }
 0x114   :  { %v542_v51 = vpop.f32.mrb[15].mxu0 }
 0x115   :  { %v1053_v52 = vpop.f32.mrb[14].mxu1  ;;  %406 = vst [vmem:[%s1095_s2 + $0x30] sm:$0xff] %v352_v48  ;;  %v421_v53 = vadd.f32 %v420_v46, %v352_v48  ;;  %v444_v54 = vmul.f32 %v352_v48, %v352_v48  ;;  %v543_v55 = vadd.f32 %v542_v51, %v541_v50 }
 0x116   :  { %v391_v56 = vpop.f32.mrb[15].mxu1 }
 0x117   :  { %v459_v57 = vadd.f32 %v458_v49, %v444_v54  ;;  %v357_v58 = vadd.f32 %v643_v16, %v543_v55  ;;  %v544_v59 = vpop.f32.mrb[16].mxu0 }
 0x118   :  { %v545_v60 = vpop.f32.mrb[17].mxu0 }
 0x119   :  { %407 = vst [vmem:[%s1095_s2 + $0x38] sm:$0xff] %v357_v58  ;;  %v445_v61 = vmul.f32 %v357_v58, %v357_v58  ;;  %v546_v62 = vadd.f32 %v545_v60, %v544_v59  ;;  %v422_v63 = vadd.f32 %v421_v53, %v357_v58 }
 0x11b   :  { %v362_v0 = vadd.f32 %v546_v62, %v361_v29  ;;  %v460_v1 = vadd.f32 %v459_v57, %v445_v61  ;;  %v547_v2 = vpop.f32.mrb[18].mxu0 }
 0x11c   :  { %v548_v3 = vpop.f32.mrb[19].mxu0 }
 0x11d   :  { %408 = vst [vmem:[%s1095_s2 + $0x40] sm:$0xff] %v362_v0  ;;  %v423_v4 = vadd.f32 %v422_v63, %v362_v0  ;;  %v446_v5 = vmul.f32 %v362_v0, %v362_v0  ;;  %v549_v6 = vadd.f32 %v548_v3, %v547_v2 }
 0x11f   :  { %v461_v7 = vadd.f32 %v460_v1, %v446_v5  ;;  %v367_v8 = vadd.f32 %v646_v25, %v549_v6  ;;  %v550_v9 = vpop.f32.mrb[20].mxu0 }
 0x120   :  { %v551_v10 = vpop.f32.mrb[21].mxu0 }
 0x121   :  { %409 = vst [vmem:[%s1095_s2 + $0x48] sm:$0xff] %v367_v8  ;;  %v447_v11 = vmul.f32 %v367_v8, %v367_v8  ;;  %v552_v12 = vadd.f32 %v551_v10, %v550_v9  ;;  %v424_v13 = vadd.f32 %v423_v4, %v367_v8 }
 0x123   :  { %v372_v14 = vadd.f32 %v552_v12, %v371_v38  ;;  %v462_v15 = vadd.f32 %v461_v7, %v447_v11  ;;  %v553_v16 = vpop.f32.mrb[22].mxu0 }
 0x124   :  { %v554_v17 = vpop.f32.mrb[23].mxu0 }
 0x125   :  { %410 = vst [vmem:[%s1095_s2 + $0x50] sm:$0xff] %v372_v14  ;;  %v425_v18 = vadd.f32 %v424_v13, %v372_v14  ;;  %v448_v19 = vmul.f32 %v372_v14, %v372_v14  ;;  %v555_v20 = vadd.f32 %v554_v17, %v553_v16 }
 0x127   :  { %v463_v21 = vadd.f32 %v462_v15, %v448_v19  ;;  %v377_v22 = vadd.f32 %v649_v34, %v555_v20  ;;  %v556_v23 = vpop.f32.mrb[24].mxu0 }
 0x128   :  { %v557_v24 = vpop.f32.mrb[25].mxu0 }
 0x129   :  { %411 = vst [vmem:[%s1095_s2 + $0x58] sm:$0xff] %v377_v22  ;;  %v449_v25 = vmul.f32 %v377_v22, %v377_v22  ;;  %v558_v26 = vadd.f32 %v557_v24, %v556_v23  ;;  %v426_v27 = vadd.f32 %v425_v18, %v377_v22 }
 0x12b   :  { %v382_v28 = vadd.f32 %v558_v26, %v381_v47  ;;  %v464_v29 = vadd.f32 %v463_v21, %v449_v25  ;;  %v559_v30 = vpop.f32.mrb[26].mxu0 }
 0x12c   :  { %v560_v31 = vpop.f32.mrb[27].mxu0 }
 0x12d   :  { %412 = vst [vmem:[%s1095_s2 + $0x60] sm:$0xff] %v382_v28  ;;  %v427_v32 = vadd.f32 %v426_v27, %v382_v28  ;;  %v450_v33 = vmul.f32 %v382_v28, %v382_v28  ;;  %v561_v34 = vadd.f32 %v560_v31, %v559_v30 }
 0x12f   :  { %v465_v35 = vadd.f32 %v464_v29, %v450_v33  ;;  %v387_v36 = vadd.f32 %v1048_v43, %v561_v34  ;;  %v562_v37 = vpop.f32.mrb[28].mxu0 }
 0x130   :  { %v563_v38 = vpop.f32.mrb[29].mxu0 }
 0x131   :  { %413 = vst [vmem:[%s1095_s2 + $0x68] sm:$0xff] %v387_v36  ;;  %v451_v39 = vmul.f32 %v387_v36, %v387_v36  ;;  %v564_v40 = vadd.f32 %v563_v38, %v562_v37  ;;  %v428_v41 = vadd.f32 %v427_v32, %v387_v36 }
 0x133   :  { %v392_v42 = vadd.f32 %v564_v40, %v391_v56  ;;  %v466_v44 = vadd.f32 %v465_v35, %v451_v39  ;;  %v565_v45 = vpop.f32.mrb[30].mxu0 }
 0x134   :  { %v566_v46 = vpop.f32.mrb[31].mxu0 }
 0x135   :  { %414 = vst [vmem:[%s1095_s2 + $0x70] sm:$0xff] %v392_v42  ;;  %v429_v47 = vadd.f32 %v428_v41, %v392_v42  ;;  %v452_v48 = vmul.f32 %v392_v42, %v392_v42  ;;  %v567_v43 = vadd.f32 %v566_v46, %v565_v45 }
 0x137   :  { %v467_v49 = vadd.f32 %v466_v44, %v452_v48  ;;  %v397_v50 = vadd.f32 %v1053_v52, %v567_v43 }
 0x139   :  { %415 = vst [vmem:[%s1095_s2 + $0x78] sm:$0xff] %v397_v50  ;;  %v430_v51 = vadd.f32 %v429_v47, %v397_v50  ;;  %v453_v53 = vmul.f32 %v397_v50, %v397_v50 }
 0x13b   :  { %v431_v54 = vrot.slane %v430_v51, 4  ;;  %v468_v55 = vadd.f32 %v467_v49, %v453_v53 }
 0x13d   :  { %v432_v56 = vadd.f32 %v431_v54, %v430_v51  ;;  %v469_v57 = vrot.slane %v468_v55, 4 }
 0x13f   :  { %v433_v58 = vrot.slane %v432_v56, 2  ;;  %v470_v59 = vadd.f32 %v469_v57, %v468_v55 }
 0x141   :  { %v434_v60 = vadd.f32 %v433_v58, %v432_v56  ;;  %v471_v61 = vrot.slane %v470_v59, 2 }
 0x143   :  { %v435_v62 = vrot.slane %v434_v60, 1  ;;  %v472_v63 = vadd.f32 %v471_v61, %v470_v59 }
 0x145   :  { %v436_v0 = vadd.f32 %v435_v62, %v434_v60  ;;  %v473_v1 = vrot.slane %v472_v63, 1 }
 0x147   :  { %437 = vst [vmem:[%s1096_s3] sm:$0x1] %v436_v0  ;;  %v474_v52 = vadd.f32 %v473_v1, %v472_v63 }
 0x149   :  { %475 = vst [vmem:[%s1097_s4] sm:$0x1] %v474_v52 }

</bundles_post_ra>
